<compile_context>
chip_gen: v7x
topology: tpu7x:2x2x1
jax: 0.10.0
libtpu: 0.0.40
codegen_flags: <defaults>
</compile_context>

<pallas_src>
import jax
import jax.numpy as jnp
from jax.experimental import pallas as pl
from jax.experimental.pallas import tpu as pltpu


# ----------------------------- hardware hints ------------------------------ #

def _device_kind():
    try:
        return jax.devices()[0].device_kind.lower()
    except Exception:
        return ""


def _act_dtype():
    # bf16 VALU exists on v6e/v7x; v5e and older do elementwise math in f32.
    kind = _device_kind()
    if any(v in kind for v in ("v2", "v3", "v4", "v5")):
        return jnp.float32
    return jnp.bfloat16


def _want_multi_step():
    # v7x has 2 TensorCores per chip: give the "parallel" grid axis >= 2 steps.
    return "v7" in _device_kind()


def _vmem_cap_bytes():
    try:
        return int(0.75 * pltpu.get_tpu_info().vmem_capacity_bytes)
    except Exception:
        return 64 << 20


# -------------------------------- kernel ----------------------------------- #

def _make_kernel(act_dtype):
    def kernel(xt_ref, w1t_ref, w2t_ref, w3_ref, o_ref):
        xt = xt_ref[...]                                            # (D, tm) bf16

        # dense_1 + LeakyReLU(0.1):  h1^T = W1^T @ x^T  (bf16 MXU, f32 accumulate)
        h1 = jnp.dot(w1t_ref[...], xt, preferred_element_type=jnp.float32)
        h1 = h1.astype(act_dtype)
        h1 = jnp.maximum(h1, 0.1 * h1)                              # 2-op LeakyReLU

        # dense_2 + LeakyReLU(0.1):  h2^T = W2^T @ h1^T
        h2 = jnp.dot(w2t_ref[...], h1.astype(jnp.bfloat16),
                     preferred_element_type=jnp.float32)
        h2 = h2.astype(act_dtype)
        h2 = jnp.maximum(h2, 0.1 * h2)

        # dense_3 (output width 1): VPU multiply + sublane reduce (f32 accumulate).
        # Result is already lane-dense (1, tm).  sigmoid >= 0 so torch.abs is a no-op.
        logits = jnp.sum(h2 * w3_ref[...], axis=0, keepdims=True)   # (1, tm) f32
        o_ref[...] = jax.nn.sigmoid(logits).astype(o_ref.dtype)
    return kernel


# ------------------------------ tiling logic ------------------------------- #

def _pick_tile(n, tm, *, multi_step=False):
    if tm is not None:
        assert n % tm == 0, "tm must divide (padded) N"
        assert tm % 128 == 0 or tm == n, "tm must be a multiple of 128 or equal N"
        return tm
    if n % 128 != 0:
        # Tiny N (wrapper only pads when N > 128): single full-width tile.
        return n
    max_tm = min(n, 1024)
    if multi_step and n >= 256:
        max_tm = min(max_tm, n // 2)   # >= 2 grid steps so both v7x TCs get work
    # Prefer 512-/256-aligned tiles (fills the 2x256 MXU); fall back to 128.
    for align in (512, 256, 128):
        t = (max_tm // align) * align
        while t >= align:
            if n % t == 0:
                return t
            t -= align
    return n


# ------------------------------- public API -------------------------------- #

def prepare_discriminator_params(w1, w2, w3):
    """Hoisted layout plumbing: transposed bf16 weights. Do this ONCE and reuse."""
    return (jnp.asarray(w1).T.astype(jnp.bfloat16),   # (D, D)
            jnp.asarray(w2).T.astype(jnp.bfloat16),   # (D, D)
            jnp.asarray(w3).astype(jnp.float32))      # (D, 1)


def discriminator_apply(params, x, *, tm=None):
    w1t, w2t, w3c = params
    N, D = x.shape
    assert w1t.shape == (D, D) and w2t.shape == (D, D) and w3c.shape == (D, 1)

    # Ragged N: pad the lane axis up to a multiple of 128 so the row tile stays
    # large; padded columns are computed and dropped after the call.
    n_pad = N if (N <= 128 or N % 128 == 0) else pl.cdiv(N, 128) * 128
    tm = _pick_tile(n_pad, tm, multi_step=_want_multi_step())

    # VMEM budget: x tile (double-buffered) + weights + f32 intermediates.
    cap = _vmem_cap_bytes()

    def _est(t):
        return (2 * (D * t * 2 + t * 4)            # x^T tile + out tile (x2 buffers)
                + 2 * (2 * D * D * 2 + D * 4)      # weights (headroom for 2 buffers)
                + 4 * D * t * 4)                   # f32 intermediates (generous)

    while tm >= 256 and tm % 256 == 0 and _est(tm) > cap:
        tm //= 2                                   # keep large-D cases under the cap
    est = _est(tm)
    vmem_limit = None if est <= (12 << 20) else min(2 * est, cap)

    grid = (n_pad // tm,)

    xt = x.T.astype(jnp.bfloat16)                  # (D, N)
    if n_pad != N:
        xt = jnp.pad(xt, ((0, 0), (0, n_pad - N)))

    kernel = _make_kernel(_act_dtype())

    def build(single_buffer_weights):
        w_kw = {}
        if single_buffer_weights:
            # Resident weights (constant index_map) need no double-buffering.
            w_kw = dict(pipeline_mode=pl.Buffered(1))
        return pl.pallas_call(
            kernel,
            out_shape=jax.ShapeDtypeStruct((1, n_pad), jnp.float32),
            grid_spec=pltpu.PrefetchScalarGridSpec(
                num_scalar_prefetch=0,
                grid=grid,
                in_specs=[
                    pl.BlockSpec((D, tm), lambda i: (0, i)),          # x^T row-tile
                    pl.BlockSpec((D, D), lambda i: (0, 0), **w_kw),   # W1^T resident
                    pl.BlockSpec((D, D), lambda i: (0, 0), **w_kw),   # W2^T resident
                    pl.BlockSpec((D, 1), lambda i: (0, 0), **w_kw),   # W3   resident
                ],
                out_specs=pl.BlockSpec((1, tm), lambda i: (0, i)),    # lane-dense out
            ),
            compiler_params=pltpu.CompilerParams(
                dimension_semantics=("parallel",),
                vmem_limit_bytes=vmem_limit,
            ),
        )

    try:
        out = build(True)(xt, w1t, w2t, w3c)
        out = jax.block_until_ready(out)
    except Exception:
        # Fallback for jax versions that reject pipeline_mode on pallas_call specs.
        out = build(False)(xt, w1t, w2t, w3c)

    return out[0, :N].reshape(N, 1)


def discriminator_forward(x, w1, w2, w3, *, tm=None):
    return discriminator_apply(prepare_discriminator_params(w1, w2, w3), x, tm=tm)


# ------------------------------- reference --------------------------------- #

def _reference(x, w1, w2, w3):
    def lrelu(v):
        return jnp.where(v > 0, v, 0.1 * v)
    h1 = lrelu(x @ w1)
    h2 = lrelu(h1 @ w2)
    return jnp.abs(jax.nn.sigmoid(h2 @ w3))


if __name__ == "__main__":
    # Small, deterministic setup: hr_dim = 32, batch of 32 rows.
    N, D = 32, 32
    key = jax.random.PRNGKey(0)
    kx, k1, k2, k3 = jax.random.split(key, 4)

    x = jax.random.normal(kx, (N, D), dtype=jnp.float32)
    # Dense weights ~ Normal(mean_dense=0.0, std_dense=0.01), deterministic.
    mean_dense, std_dense = 0.0, 0.01
    w1 = mean_dense + std_dense * jax.random.normal(k1, (D, D), dtype=jnp.float32)
    w2 = mean_dense + std_dense * jax.random.normal(k2, (D, D), dtype=jnp.float32)
    w3 = mean_dense + std_dense * jax.random.normal(k3, (D, 1), dtype=jnp.float32)

    params = prepare_discriminator_params(w1, w2, w3)   # hoisted: cast/transpose once
    out = discriminator_apply(params, x)
    out = jax.block_until_ready(out)

    ref = _reference(x, w1, w2, w3)
    assert out.shape == (N, 1)
    # bf16 matmul operands / activations (f32 accumulation) -> loose tolerance vs f32.
    assert jnp.allclose(out, ref, atol=2e-2, rtol=2e-2), float(jnp.max(jnp.abs(out - ref)))

    print("KERNEL_OK")
</pallas_src>

<mosaic_0001>
module attributes {stable_mosaic.version = 11 : i64} {
  func.func @kernel(%arg0: i32, %arg1: memref<32x32xbf16, #tpu.memory_space<vmem>>, %arg2: memref<32x32xbf16, #tpu.memory_space<vmem>>, %arg3: memref<32x32xbf16, #tpu.memory_space<vmem>>, %arg4: memref<32x1xf32, #tpu.memory_space<vmem>>, %arg5: memref<1x32xf32, #tpu.memory_space<vmem>>) attributes {dimension_semantics = [#tpu.dimension_semantics<parallel>], iteration_bounds = array<i64: 1>, scalar_prefetch = 0 : i64, scratch_operands = 0 : i64, tpu.core_type = #tpu.core_type<tc>, window_params = [{transform_indices = @transform_0, window_bounds = array<i64: 32, 32>}, {pipeline_mode = #tpu.pipeline_mode<synchronous>, transform_indices = @transform_1, window_bounds = array<i64: 32, 32>}, {pipeline_mode = #tpu.pipeline_mode<synchronous>, transform_indices = @transform_2, window_bounds = array<i64: 32, 32>}, {pipeline_mode = #tpu.pipeline_mode<synchronous>, transform_indices = @transform_3, window_bounds = array<i64: 32, 1>}, {transform_indices = @transform_4, window_bounds = array<i64: 1, 32>}]} {
    %c0 = arith.constant 0 : index
    %c0_0 = arith.constant 0 : index
    %0 = vector.load %arg1[%c0, %c0_0] : memref<32x32xbf16, #tpu.memory_space<vmem>>, vector<32x32xbf16>
    %c0_1 = arith.constant 0 : index
    %c0_2 = arith.constant 0 : index
    %1 = vector.load %arg2[%c0_1, %c0_2] : memref<32x32xbf16, #tpu.memory_space<vmem>>, vector<32x32xbf16>
    %cst = arith.constant dense<0.000000e+00> : vector<32x32xf32>
    %2 = tpu.matmul %1, %0, %cst {dimension_numbers = #tpu.dot_dimension_numbers<[1], [0], [0], [1], [0, 0, 1, 1], [], []>} : vector<32x32xbf16>, vector<32x32xbf16>, vector<32x32xf32> -> vector<32x32xf32>
    %3 = arith.truncf %2 : vector<32x32xf32> to vector<32x32xbf16>
    %cst_3 = arith.constant 1.000980e-01 : bf16
    %4 = vector.broadcast %cst_3 : bf16 to vector<32x32xbf16>
    %5 = arith.mulf %4, %3 : vector<32x32xbf16>
    %6 = arith.maximumf %3, %5 : vector<32x32xbf16>
    %c0_4 = arith.constant 0 : index
    %c0_5 = arith.constant 0 : index
    %7 = vector.load %arg3[%c0_4, %c0_5] : memref<32x32xbf16, #tpu.memory_space<vmem>>, vector<32x32xbf16>
    %cst_6 = arith.constant dense<0.000000e+00> : vector<32x32xf32>
    %8 = tpu.matmul %7, %6, %cst_6 {dimension_numbers = #tpu.dot_dimension_numbers<[1], [0], [0], [1], [0, 0, 1, 1], [], []>} : vector<32x32xbf16>, vector<32x32xbf16>, vector<32x32xf32> -> vector<32x32xf32>
    %9 = arith.truncf %8 : vector<32x32xf32> to vector<32x32xbf16>
    %cst_7 = arith.constant 1.000980e-01 : bf16
    %10 = vector.broadcast %cst_7 : bf16 to vector<32x32xbf16>
    %11 = arith.mulf %10, %9 : vector<32x32xbf16>
    %12 = arith.maximumf %9, %11 : vector<32x32xbf16>
    %c0_8 = arith.constant 0 : index
    %c0_9 = arith.constant 0 : index
    %13 = vector.load %arg4[%c0_8, %c0_9] : memref<32x1xf32, #tpu.memory_space<vmem>>, vector<32x1xf32>
    %14 = arith.extf %12 : vector<32x32xbf16> to vector<32x32xf32>
    %15 = vector.broadcast %13 : vector<32x1xf32> to vector<32x32xf32>
    %16 = arith.mulf %14, %15 : vector<32x32xf32>
    %cst_10 = arith.constant dense<0.000000e+00> : vector<32xf32>
    %17 = vector.multi_reduction <add>, %16, %cst_10 [0] : vector<32x32xf32> to vector<32xf32>
    %18 = vector.shape_cast %17 : vector<32xf32> to vector<1x32xf32>
    %19 = arith.negf %18 : vector<1x32xf32>
    %20 = math.exp %19 : vector<1x32xf32>
    %cst_11 = arith.constant 1.000000e+00 : f32
    %21 = vector.broadcast %cst_11 : f32 to vector<1x32xf32>
    %22 = arith.addf %21, %20 : vector<1x32xf32>
    %23 = arith.divf %21, %22 : vector<1x32xf32>
    %c0_12 = arith.constant 0 : index
    %c0_13 = arith.constant 0 : index
    %24 = vector.load %arg5[%c0_12, %c0_13] : memref<1x32xf32, #tpu.memory_space<vmem>>, vector<1x32xf32>
    tpu.vector_store %arg5[%c0_12, %c0_13], %23 {strides = array<i32>} : memref<1x32xf32, #tpu.memory_space<vmem>>, vector<1x32xf32>,
    return
  }
  func.func @transform_0(%arg0: i32) -> (i32, i32) {
    %c0_i32 = arith.constant 0 : i32
    %c0_i32_0 = arith.constant 0 : i32
    return %c0_i32, %arg0 : i32, i32
  }
  func.func @transform_1(%arg0: i32) -> (i32, i32) {
    %c0_i32 = arith.constant 0 : i32
    %c0_i32_0 = arith.constant 0 : i32
    %c0_i32_1 = arith.constant 0 : i32
    return %c0_i32, %c0_i32_0 : i32, i32
  }
  func.func @transform_2(%arg0: i32) -> (i32, i32) {
    %c0_i32 = arith.constant 0 : i32
    %c0_i32_0 = arith.constant 0 : i32
    %c0_i32_1 = arith.constant 0 : i32
    return %c0_i32, %c0_i32_0 : i32, i32
  }
  func.func @transform_3(%arg0: i32) -> (i32, i32) {
    %c0_i32 = arith.constant 0 : i32
    %c0_i32_0 = arith.constant 0 : i32
    %c0_i32_1 = arith.constant 0 : i32
    return %c0_i32, %c0_i32_0 : i32, i32
  }
  func.func @transform_4(%arg0: i32) -> (i32, i32) {
    %c0_i32 = arith.constant 0 : i32
    %c0_i32_0 = arith.constant 0 : i32
    return %c0_i32, %arg0 : i32, i32
  }
}

module attributes {stable_mosaic.version = 11 : i64} {
  func.func @kernel(%arg0: i32, %arg1: memref<32x32xbf16, #tpu.memory_space<vmem>>, %arg2: memref<32x32xbf16, #tpu.memory_space<vmem>>, %arg3: memref<32x32xbf16, #tpu.memory_space<vmem>>, %arg4: memref<32x1xf32, #tpu.memory_space<vmem>>, %arg5: memref<1x32xf32, #tpu.memory_space<vmem>>) attributes {dimension_semantics = [#tpu.dimension_semantics<parallel>], iteration_bounds = array<i64: 1>, scalar_prefetch = 0 : i64, scratch_operands = 0 : i64, tpu.core_type = #tpu.core_type<tc>, window_params = [{transform_indices = @transform_0, window_bounds = array<i64: 32, 32>}, {pipeline_mode = #tpu.pipeline_mode<synchronous>, transform_indices = @transform_1, window_bounds = array<i64: 32, 32>}, {pipeline_mode = #tpu.pipeline_mode<synchronous>, transform_indices = @transform_2, window_bounds = array<i64: 32, 32>}, {pipeline_mode = #tpu.pipeline_mode<synchronous>, transform_indices = @transform_3, window_bounds = array<i64: 32, 1>}, {transform_indices = @transform_4, window_bounds = array<i64: 1, 32>}]} {
    %c0 = arith.constant 0 : index
    %c0_0 = arith.constant 0 : index
    %0 = vector.load %arg1[%c0, %c0_0] : memref<32x32xbf16, #tpu.memory_space<vmem>>, vector<32x32xbf16>
    %c0_1 = arith.constant 0 : index
    %c0_2 = arith.constant 0 : index
    %1 = vector.load %arg2[%c0_1, %c0_2] : memref<32x32xbf16, #tpu.memory_space<vmem>>, vector<32x32xbf16>
    %cst = arith.constant dense<0.000000e+00> : vector<32x32xf32>
    %2 = tpu.matmul %1, %0, %cst {dimension_numbers = #tpu.dot_dimension_numbers<[1], [0], [0], [1], [0, 0, 1, 1], [], []>} : vector<32x32xbf16>, vector<32x32xbf16>, vector<32x32xf32> -> vector<32x32xf32>
    %3 = arith.truncf %2 : vector<32x32xf32> to vector<32x32xbf16>
    %cst_3 = arith.constant 1.000980e-01 : bf16
    %4 = vector.broadcast %cst_3 : bf16 to vector<32x32xbf16>
    %5 = arith.mulf %4, %3 : vector<32x32xbf16>
    %6 = arith.maximumf %3, %5 : vector<32x32xbf16>
    %c0_4 = arith.constant 0 : index
    %c0_5 = arith.constant 0 : index
    %7 = vector.load %arg3[%c0_4, %c0_5] : memref<32x32xbf16, #tpu.memory_space<vmem>>, vector<32x32xbf16>
    %cst_6 = arith.constant dense<0.000000e+00> : vector<32x32xf32>
    %8 = tpu.matmul %7, %6, %cst_6 {dimension_numbers = #tpu.dot_dimension_numbers<[1], [0], [0], [1], [0, 0, 1, 1], [], []>} : vector<32x32xbf16>, vector<32x32xbf16>, vector<32x32xf32> -> vector<32x32xf32>
    %9 = arith.truncf %8 : vector<32x32xf32> to vector<32x32xbf16>
    %cst_7 = arith.constant 1.000980e-01 : bf16
    %10 = vector.broadcast %cst_7 : bf16 to vector<32x32xbf16>
    %11 = arith.mulf %10, %9 : vector<32x32xbf16>
    %12 = arith.maximumf %9, %11 : vector<32x32xbf16>
    %c0_8 = arith.constant 0 : index
    %c0_9 = arith.constant 0 : index
    %13 = vector.load %arg4[%c0_8, %c0_9] : memref<32x1xf32, #tpu.memory_space<vmem>>, vector<32x1xf32>
    %14 = arith.extf %12 : vector<32x32xbf16> to vector<32x32xf32>
    %15 = vector.broadcast %13 : vector<32x1xf32> to vector<32x32xf32>
    %16 = arith.mulf %14, %15 : vector<32x32xf32>
    %cst_10 = arith.constant dense<0.000000e+00> : vector<32xf32>
    %17 = vector.multi_reduction <add>, %16, %cst_10 [0] : vector<32x32xf32> to vector<32xf32>
    %18 = vector.shape_cast %17 : vector<32xf32> to vector<1x32xf32>
    %19 = arith.negf %18 : vector<1x32xf32>
    %20 = math.exp %19 : vector<1x32xf32>
    %cst_11 = arith.constant 1.000000e+00 : f32
    %21 = vector.broadcast %cst_11 : f32 to vector<1x32xf32>
    %22 = arith.addf %21, %20 : vector<1x32xf32>
    %23 = arith.divf %21, %22 : vector<1x32xf32>
    %c0_12 = arith.constant 0 : index
    %c0_13 = arith.constant 0 : index
    %24 = vector.load %arg5[%c0_12, %c0_13] : memref<1x32xf32, #tpu.memory_space<vmem>>, vector<1x32xf32>
    tpu.vector_store %arg5[%c0_12, %c0_13], %23 {strides = array<i32>} : memref<1x32xf32, #tpu.memory_space<vmem>>, vector<1x32xf32>,
    return
  }
  func.func @transform_0(%arg0: i32) -> (i32, i32) {
    %c0_i32 = arith.constant 0 : i32
    %c0_i32_0 = arith.constant 0 : i32
    return %c0_i32, %arg0 : i32, i32
  }
  func.func @transform_1(%arg0: i32) -> (i32, i32) {
    %c0_i32 = arith.constant 0 : i32
    %c0_i32_0 = arith.constant 0 : i32
    %c0_i32_1 = arith.constant 0 : i32
    return %c0_i32, %c0_i32_0 : i32, i32
  }
  func.func @transform_2(%arg0: i32) -> (i32, i32) {
    %c0_i32 = arith.constant 0 : i32
    %c0_i32_0 = arith.constant 0 : i32
    %c0_i32_1 = arith.constant 0 : i32
    return %c0_i32, %c0_i32_0 : i32, i32
  }
  func.func @transform_3(%arg0: i32) -> (i32, i32) {
    %c0_i32 = arith.constant 0 : i32
    %c0_i32_0 = arith.constant 0 : i32
    %c0_i32_1 = arith.constant 0 : i32
    return %c0_i32, %c0_i32_0 : i32, i32
  }
  func.func @transform_4(%arg0: i32) -> (i32, i32) {
    %c0_i32 = arith.constant 0 : i32
    %c0_i32_0 = arith.constant 0 : i32
    return %c0_i32, %arg0 : i32, i32
  }
}

</mosaic_0001>

<bundles_post_ra>
// kernel: tpu_custom_call.1
= control target key start
LH: loop header
LB: loop body
LE: loop exit
PB: predicated region body
PF: predicated region fallthrough
CT: control target
= control target key end

     0   :  { %9 = vsyncpa [#allocation3], 0  ;;  %s455_s0 = inlined_call_operand.vmem [shape: bf16[32,32], index: 0, kind: input, shape index: {}]   ;;  %s456_s1 = inlined_call_operand.vmem [shape: bf16[32,32], index: 1, kind: input, shape index: {}]   ;;  %s457_s2 = inlined_call_operand.hbm [shape: bf16[32,32], index: 2, kind: input, shape index: {}]   ;;  %s458_s3 = inlined_call_operand.vmem [shape: f32[32,1], index: 3, kind: input, shape index: {}]   ;;  %s459_s4 = inlined_call_operand.hbm [shape: f32[1,32], index: 4, kind: output, shape index: {}]  }
   0x1   :  { %10 = vsyncpa [#allocation4], 0  ;;  %s369_s15 = smov [#allocation2]   ;;  %s321_s19 = scalar_lea.hbm %s457_s2, 256 }
   0x2   :  { %s20_s16 = sshll.u32 %s369_s15, 4  ;;  %p322_p0 = scmp.ne.s32.totalorder %s457_s2, %s321_s19  ;;  %s21_s16 = int_to_ptr.vmem [resolvable:$true] %s20_s16 }
   0x3   :  { %p325_p1 = scmp.lt.u32.totalorder %s321_s19, %s457_s2 }
   0x5   :  { %p327_p2 = pnand %p325_p1, %p322_p0 }
   0x7   :  { %330 = shalt.err (!%p327_p2)
}
   0x8   :  { %s331_s24 = scalar_lea.vmem %s21_s16, 256  ;;  %p336_p4 = scmp.lt.s32.totalorder %s21_s16, %s21_s16 }
   0x9   :  { %p332_p3 = scmp.ne.s32.totalorder %s21_s16, %s331_s24  ;;  %p337_p5 = scmp.lt.s32.totalorder %s331_s24, %s331_s24 }
   0xb   :  { %p338_p6 = por %p337_p5, %p336_p4 }
   0xd   :  { %p339_p7 = pnand %p338_p6, %p332_p3 }
   0xf   :  { %342 = shalt.err (!%p339_p7)
}
  0x10   :  { %s370_s25 = smov 64   ;;  %s371_s26 = smov 4  }
  0x11   :  { %26 = dma.hbm_to_vmem [thread:$0]  %s457_s2, 256, %s21_s16, [#allocation3], %s370_s25, %s370_s25, %s371_s26  }
  0x12   :  { %365 = dma.done.wait [#allocation3], 256  }
  0x13   :  { %366 = vsyncadd [#allocation3], 4294967040  ;;  %v311_v0 = vld [vmem:[%s455_s0] sm:$0xff]   ;;  %v312_v1 = vld [vmem:[%s455_s0 + $0x8] sm:$0xff]   ;;  %vm64_vm0 = vcmask 261120   ;;  %v372_v7 = vmov 0  }
  0x14   :  { %288 = vmatprep.subr.bf16.mxu0 %v311_v0  ;;  %v313_v2 = vld [vmem:[%s456_s1] sm:$0xff]   ;;  %v314_v3 = vld [vmem:[%s456_s1 + $0x8] sm:$0xff]   ;;  %v203_v6 = vld [vmem:[%s458_s3 + $0x10] sm:$0xff]  ;;  %309 = vset.pattern.permute.xlu0 %v372_v7  ;;  %vm252_vm1 = vcmask 253952  }
  0x15   :  { %289 = vmatpush3.bf16.msra.mxu0 %v311_v0  ;;  %292 = vmatprep.mubr.msk.bf16.mxu0 %vm64_vm0, %v313_v2  ;;  %v315_v4 = vld [vmem:[#allocation2] sm:$0xff]   ;;  %v202_v8 = vld [vmem:[%s458_s3 + $0x8] sm:$0xff]  ;;  %v204_v9 = vld [vmem:[%s458_s3 + $0x18] sm:$0xff] }
  0x16   :  { %290 = vmatprep.subr.bf16.mxu0 %v312_v1  ;;  %300 = vmatprep.mubr.msk.bf16.mxu1 %vm64_vm0, %v315_v4  ;;  %v201_v5 = vld [vmem:[%s458_s3] sm:$0xff]  ;;  %v316_v20 = vld [vmem:[#allocation2 + $0x8] sm:$0xff]   ;;  %s373_s3 = smov [#allocation5]  }
  0x17   :  { %310 = vset.pattern.permute.xlu1 %v372_v7  ;;  %211 = vperm.xlu0 %309, %v201_v5   ;;  %s260_s16 = sshll.u32 %s373_s3, 4  ;;  %s261_s16 = int_to_ptr.vmem [resolvable:$true] %s260_s16 }
  0x18   :  { %221 = vperm.xlu1 %310, %v203_v6   ;;  %s343_s17 = scalar_lea.vmem %s261_s16, 16  ;;  %s347_s18 = scalar_lea.vmem %s261_s16, 32 }
  0x19   :  { %291 = vmatpush3.bf16.msra.mxu0 %v312_v1  ;;  %p344_p8 = scmp.ne.s32.totalorder %s261_s16, %s343_s17  ;;  %p348_p9 = scmp.lt.s32.totalorder %s261_s16, %s261_s16 }
  0x1a   :  { %p349_p10 = scmp.lt.s32.totalorder %s347_s18, %s343_s17 }
  0x1b   :  { %216 = vperm.xlu0 %309, %v202_v8  }
  0x1c   :  { %293 = vmatmul.mubr.msk.bf16.vlgmr.msra.gmra.mrb[0].mxu0 %vm64_vm0, %v314_v3  ;;  %226 = vperm.xlu1 %310, %v204_v9   ;;  %p350_p11 = por %p349_p10, %p348_p9 }
  0x1e   :  { %p351_p12 = pnand %p350_p11, %p344_p8 }
  0x96   :  { %v212_v28 = vpop.permute.xlu0 %211 }
  0x97   :  { %v222_v29 = vpop.permute.xlu1 %221 }
  0x9a   :  { %v217_v37 = vpop.permute.xlu0 %216 }
  0x9b   :  { %v227_v38 = vpop.permute.xlu1 %226 }
  0xef   :  { %v294_v10 = vpop.f32.mrb[0].mxu0 }
  0xf0   :  { %v105_v11 = vpop.f32.mrb[1].mxu0 }
  0xf1   :  { %v295_v12 = vpop.f32.mrb[2].mxu0 }
  0xf2   :  { %v121_v13 = vpack.c.bf16 %v295_v12, %v294_v10  ;;  %v108_v14 = vpop.f32.mrb[3].mxu0 }
  0xf3   :  { %v120_v15 = vpack.c.bf16 %v108_v14, %v105_v11 }
  0xf4   :  { %v123_v16 = vmul.bf16 1036860877, %v121_v13 }
  0xf5   :  { %v122_v17 = vmul.bf16 1036860877, %v120_v15 }
  0xf6   :  { %v125_v19 = vmax.bf16 %v123_v16, %v121_v13 }
  0xf7   :  { %v124_v18 = vmax.bf16 %v122_v17, %v120_v15 }
  0xf9   :  { %296 = vmatprep.subr.bf16.mxu1 %v124_v18 }
  0xfa   :  { %297 = vmatpush3.bf16.msra.mxu1 %v124_v18 }
  0xfb   :  { %298 = vmatprep.subr.bf16.mxu1 %v125_v19 }
  0xfe   :  { %299 = vmatpush3.bf16.msra.mxu1 %v125_v19 }
 0x101   :  { %301 = vmatmul.mubr.msk.bf16.vlgmr.msra.gmra.mrb[0].mxu1 %vm64_vm0, %v316_v20 }
 0x1d4   :  { %v302_v21 = vpop.f32.mrb[0].mxu1 }
 0x1d5   :  { %v180_v22 = vpop.f32.mrb[1].mxu1 }
 0x1d6   :  { %v303_v23 = vpop.f32.mrb[2].mxu1 }
 0x1d7   :  { %v196_v24 = vpack.c.bf16 %v303_v23, %v302_v21  ;;  %v183_v25 = vpop.f32.mrb[3].mxu1 }
 0x1d8   :  { %v195_v26 = vpack.c.bf16 %v183_v25, %v180_v22 }
 0x1d9   :  { %v198_v27 = vmul.bf16 1036860877, %v196_v24 }
 0x1da   :  { %v197_v30 = vmul.bf16 1036860877, %v195_v26 }
 0x1db   :  { %v200_v31 = vmax.bf16 %v198_v27, %v196_v24 }
 0x1dc   :  { %v199_v32 = vmax.bf16 %v197_v30, %v195_v26 }
 0x1dd   :  { %v207_v33 = vunpack.c.l.bf16 %v200_v31  ;;  %v208_v36 = vunpack.c.h.bf16 %v200_v31 }
 0x1de   :  { %v205_v34 = vunpack.c.l.bf16 %v199_v32  ;;  %v206_v35 = vunpack.c.h.bf16 %v199_v32 }
 0x1df   :  { %v231_v39 = vmul.f32 %v222_v29, %v207_v33  ;;  %v232_v44 = vmul.f32 %v227_v38, %v208_v36 }
 0x1e0   :  { %v229_v40 = vmul.f32 %v212_v28, %v205_v34  ;;  %v230_v41 = vmul.f32 %v217_v37, %v206_v35 }
 0x1e1   :  { %v236_v46 = vsel %vm64_vm0, %v231_v39, 0.0  ;;  %v238_v48 = vsel %vm64_vm0, %v232_v44, 0.0 }
 0x1e2   :  { %v233_v42 = vsel %vm64_vm0, %v229_v40, 0.0  ;;  %v234_v43 = vsel %vm64_vm0, %v230_v41, 0.0 }
 0x1e3   :  { %v235_v45 = vadd.f32 %v234_v43, %v233_v42 }
 0x1e5   :  { %v237_v47 = vadd.f32 %v236_v46, %v235_v45 }
 0x1e7   :  { %v239_v49 = vadd.f32 %v238_v48, %v237_v47 }
 0x1e9   :  { %v240_v50 = vrot.slane %v239_v49, 4 }
 0x1eb   :  { %v241_v51 = vadd.f32 %v240_v50, %v239_v49 }
 0x1ed   :  { %v242_v52 = vrot.slane %v241_v51, 2 }
 0x1ef   :  { %v243_v53 = vadd.f32 %v242_v52, %v241_v51 }
 0x1f1   :  { %v244_v54 = vrot.slane %v243_v53, 1 }
 0x1f3   :  { %v245_v55 = vadd.f32 %v244_v54, %v243_v53 }
 0x1f5   :  { %v279_v56 = vmul.f32 -1.442695, %v245_v55 }
 0x1f7   :  { %317 = vpow2.f32 %v279_v56 }
 0x201   :  { %v318_v57 = vpop.eup %317 }
 0x202   :  { %v249_v58 = vadd.f32 1.0, %v318_v57 }
 0x204   :  { %319 = vrcp.f32 %v249_v58 }
 0x20e   :  { %v320_v59 = vpop.eup %319 }
 0x20f   :  { %253 = vst.msk [vmem:[#allocation5] sm:$0x1] %vm252_vm1, %v320_v59 }
 0x210   :  { %354 = shalt.err (!%p351_p12)
}
 0x211   :  { %s355_s21 = scalar_lea.hbm %s459_s4, 16 }
 0x212   :  { %p356_p13 = scmp.ne.s32.totalorder %s459_s4, %s355_s21  ;;  %p359_p0 = scmp.lt.u32.totalorder %s355_s21, %s459_s4 }
 0x214   :  { %p361_p1 = pnand %p359_p0, %p356_p13 }
 0x216   :  { %364 = shalt.err (!%p361_p1)
}
 0x217   :  { %263 = dma.vmem_to_hbm [thread:$0]  %s261_s16, 16, %s459_s4, [#allocation4]  }
 0x218   :  { %367 = dma.done.wait [#allocation4], 16  }
 0x219   :  { %368 = vsyncadd [#allocation4], 4294967280 }
 0x21a   :  { %267 = vsyncpa [#allocation3], 1 }
 0x21b   :  { %268 = vsyncpa [#allocation4], 1 }

// kernel: tpu_custom_call.1
= control target key start
LH: loop header
LB: loop body
LE: loop exit
PB: predicated region body
PF: predicated region fallthrough
CT: control target
= control target key end

     0   :  { %9 = vsyncpa [#allocation3], 0  ;;  %s455_s0 = inlined_call_operand.vmem [shape: bf16[32,32], index: 0, kind: input, shape index: {}]   ;;  %s456_s1 = inlined_call_operand.vmem [shape: bf16[32,32], index: 1, kind: input, shape index: {}]   ;;  %s457_s2 = inlined_call_operand.hbm [shape: bf16[32,32], index: 2, kind: input, shape index: {}]   ;;  %s458_s3 = inlined_call_operand.vmem [shape: f32[32,1], index: 3, kind: input, shape index: {}]   ;;  %s459_s4 = inlined_call_operand.hbm [shape: f32[1,32], index: 4, kind: output, shape index: {}]  }
   0x1   :  { %10 = vsyncpa [#allocation4], 0  ;;  %s369_s15 = smov [#allocation2]   ;;  %s321_s19 = scalar_lea.hbm %s457_s2, 256 }
   0x2   :  { %s20_s16 = sshll.u32 %s369_s15, 4  ;;  %p322_p0 = scmp.ne.s32.totalorder %s457_s2, %s321_s19  ;;  %s21_s16 = int_to_ptr.vmem [resolvable:$true] %s20_s16 }
   0x3   :  { %p325_p1 = scmp.lt.u32.totalorder %s321_s19, %s457_s2 }
   0x5   :  { %p327_p2 = pnand %p325_p1, %p322_p0 }
   0x7   :  { %330 = shalt.err (!%p327_p2)
}
   0x8   :  { %s331_s24 = scalar_lea.vmem %s21_s16, 256  ;;  %p336_p4 = scmp.lt.s32.totalorder %s21_s16, %s21_s16 }
   0x9   :  { %p332_p3 = scmp.ne.s32.totalorder %s21_s16, %s331_s24  ;;  %p337_p5 = scmp.lt.s32.totalorder %s331_s24, %s331_s24 }
   0xb   :  { %p338_p6 = por %p337_p5, %p336_p4 }
   0xd   :  { %p339_p7 = pnand %p338_p6, %p332_p3 }
   0xf   :  { %342 = shalt.err (!%p339_p7)
}
  0x10   :  { %s370_s25 = smov 64   ;;  %s371_s26 = smov 4  }
  0x11   :  { %26 = dma.hbm_to_vmem [thread:$0]  %s457_s2, 256, %s21_s16, [#allocation3], %s370_s25, %s370_s25, %s371_s26  }
  0x12   :  { %365 = dma.done.wait [#allocation3], 256  }
  0x13   :  { %366 = vsyncadd [#allocation3], 4294967040  ;;  %v311_v0 = vld [vmem:[%s455_s0] sm:$0xff]   ;;  %v312_v1 = vld [vmem:[%s455_s0 + $0x8] sm:$0xff]   ;;  %vm64_vm0 = vcmask 261120   ;;  %v372_v7 = vmov 0  }
  0x14   :  { %288 = vmatprep.subr.bf16.mxu0 %v311_v0  ;;  %v313_v2 = vld [vmem:[%s456_s1] sm:$0xff]   ;;  %v314_v3 = vld [vmem:[%s456_s1 + $0x8] sm:$0xff]   ;;  %v203_v6 = vld [vmem:[%s458_s3 + $0x10] sm:$0xff]  ;;  %309 = vset.pattern.permute.xlu0 %v372_v7  ;;  %vm252_vm1 = vcmask 253952  }
  0x15   :  { %289 = vmatpush3.bf16.msra.mxu0 %v311_v0  ;;  %292 = vmatprep.mubr.msk.bf16.mxu0 %vm64_vm0, %v313_v2  ;;  %v315_v4 = vld [vmem:[#allocation2] sm:$0xff]   ;;  %v202_v8 = vld [vmem:[%s458_s3 + $0x8] sm:$0xff]  ;;  %v204_v9 = vld [vmem:[%s458_s3 + $0x18] sm:$0xff] }
  0x16   :  { %290 = vmatprep.subr.bf16.mxu0 %v312_v1  ;;  %300 = vmatprep.mubr.msk.bf16.mxu1 %vm64_vm0, %v315_v4  ;;  %v201_v5 = vld [vmem:[%s458_s3] sm:$0xff]  ;;  %v316_v20 = vld [vmem:[#allocation2 + $0x8] sm:$0xff]   ;;  %s373_s3 = smov [#allocation5]  }
  0x17   :  { %310 = vset.pattern.permute.xlu1 %v372_v7  ;;  %211 = vperm.xlu0 %309, %v201_v5   ;;  %s260_s16 = sshll.u32 %s373_s3, 4  ;;  %s261_s16 = int_to_ptr.vmem [resolvable:$true] %s260_s16 }
  0x18   :  { %221 = vperm.xlu1 %310, %v203_v6   ;;  %s343_s17 = scalar_lea.vmem %s261_s16, 16  ;;  %s347_s18 = scalar_lea.vmem %s261_s16, 32 }
  0x19   :  { %291 = vmatpush3.bf16.msra.mxu0 %v312_v1  ;;  %p344_p8 = scmp.ne.s32.totalorder %s261_s16, %s343_s17  ;;  %p348_p9 = scmp.lt.s32.totalorder %s261_s16, %s261_s16 }
  0x1a   :  { %p349_p10 = scmp.lt.s32.totalorder %s347_s18, %s343_s17 }
  0x1b   :  { %216 = vperm.xlu0 %309, %v202_v8  }
  0x1c   :  { %293 = vmatmul.mubr.msk.bf16.vlgmr.msra.gmra.mrb[0].mxu0 %vm64_vm0, %v314_v3  ;;  %226 = vperm.xlu1 %310, %v204_v9   ;;  %p350_p11 = por %p349_p10, %p348_p9 }
  0x1e   :  { %p351_p12 = pnand %p350_p11, %p344_p8 }
  0x96   :  { %v212_v28 = vpop.permute.xlu0 %211 }
  0x97   :  { %v222_v29 = vpop.permute.xlu1 %221 }
  0x9a   :  { %v217_v37 = vpop.permute.xlu0 %216 }
  0x9b   :  { %v227_v38 = vpop.permute.xlu1 %226 }
  0xef   :  { %v294_v10 = vpop.f32.mrb[0].mxu0 }
  0xf0   :  { %v105_v11 = vpop.f32.mrb[1].mxu0 }
  0xf1   :  { %v295_v12 = vpop.f32.mrb[2].mxu0 }
  0xf2   :  { %v121_v13 = vpack.c.bf16 %v295_v12, %v294_v10  ;;  %v108_v14 = vpop.f32.mrb[3].mxu0 }
  0xf3   :  { %v120_v15 = vpack.c.bf16 %v108_v14, %v105_v11 }
  0xf4   :  { %v123_v16 = vmul.bf16 1036860877, %v121_v13 }
  0xf5   :  { %v122_v17 = vmul.bf16 1036860877, %v120_v15 }
  0xf6   :  { %v125_v19 = vmax.bf16 %v123_v16, %v121_v13 }
  0xf7   :  { %v124_v18 = vmax.bf16 %v122_v17, %v120_v15 }
  0xf9   :  { %296 = vmatprep.subr.bf16.mxu1 %v124_v18 }
  0xfa   :  { %297 = vmatpush3.bf16.msra.mxu1 %v124_v18 }
  0xfb   :  { %298 = vmatprep.subr.bf16.mxu1 %v125_v19 }
  0xfe   :  { %299 = vmatpush3.bf16.msra.mxu1 %v125_v19 }
 0x101   :  { %301 = vmatmul.mubr.msk.bf16.vlgmr.msra.gmra.mrb[0].mxu1 %vm64_vm0, %v316_v20 }
 0x1d4   :  { %v302_v21 = vpop.f32.mrb[0].mxu1 }
 0x1d5   :  { %v180_v22 = vpop.f32.mrb[1].mxu1 }
 0x1d6   :  { %v303_v23 = vpop.f32.mrb[2].mxu1 }
 0x1d7   :  { %v196_v24 = vpack.c.bf16 %v303_v23, %v302_v21  ;;  %v183_v25 = vpop.f32.mrb[3].mxu1 }
 0x1d8   :  { %v195_v26 = vpack.c.bf16 %v183_v25, %v180_v22 }
 0x1d9   :  { %v198_v27 = vmul.bf16 1036860877, %v196_v24 }
 0x1da   :  { %v197_v30 = vmul.bf16 1036860877, %v195_v26 }
 0x1db   :  { %v200_v31 = vmax.bf16 %v198_v27, %v196_v24 }
 0x1dc   :  { %v199_v32 = vmax.bf16 %v197_v30, %v195_v26 }
 0x1dd   :  { %v207_v33 = vunpack.c.l.bf16 %v200_v31  ;;  %v208_v36 = vunpack.c.h.bf16 %v200_v31 }
 0x1de   :  { %v205_v34 = vunpack.c.l.bf16 %v199_v32  ;;  %v206_v35 = vunpack.c.h.bf16 %v199_v32 }
 0x1df   :  { %v231_v39 = vmul.f32 %v222_v29, %v207_v33  ;;  %v232_v44 = vmul.f32 %v227_v38, %v208_v36 }
 0x1e0   :  { %v229_v40 = vmul.f32 %v212_v28, %v205_v34  ;;  %v230_v41 = vmul.f32 %v217_v37, %v206_v35 }
 0x1e1   :  { %v236_v46 = vsel %vm64_vm0, %v231_v39, 0.0  ;;  %v238_v48 = vsel %vm64_vm0, %v232_v44, 0.0 }
 0x1e2   :  { %v233_v42 = vsel %vm64_vm0, %v229_v40, 0.0  ;;  %v234_v43 = vsel %vm64_vm0, %v230_v41, 0.0 }
 0x1e3   :  { %v235_v45 = vadd.f32 %v234_v43, %v233_v42 }
 0x1e5   :  { %v237_v47 = vadd.f32 %v236_v46, %v235_v45 }
 0x1e7   :  { %v239_v49 = vadd.f32 %v238_v48, %v237_v47 }
 0x1e9   :  { %v240_v50 = vrot.slane %v239_v49, 4 }
 0x1eb   :  { %v241_v51 = vadd.f32 %v240_v50, %v239_v49 }
 0x1ed   :  { %v242_v52 = vrot.slane %v241_v51, 2 }
 0x1ef   :  { %v243_v53 = vadd.f32 %v242_v52, %v241_v51 }
 0x1f1   :  { %v244_v54 = vrot.slane %v243_v53, 1 }
 0x1f3   :  { %v245_v55 = vadd.f32 %v244_v54, %v243_v53 }
 0x1f5   :  { %v279_v56 = vmul.f32 -1.442695, %v245_v55 }
 0x1f7   :  { %317 = vpow2.f32 %v279_v56 }
 0x201   :  { %v318_v57 = vpop.eup %317 }
 0x202   :  { %v249_v58 = vadd.f32 1.0, %v318_v57 }
 0x204   :  { %319 = vrcp.f32 %v249_v58 }
 0x20e   :  { %v320_v59 = vpop.eup %319 }
 0x20f   :  { %253 = vst.msk [vmem:[#allocation5] sm:$0x1] %vm252_vm1, %v320_v59 }
 0x210   :  { %354 = shalt.err (!%p351_p12)
}
 0x211   :  { %s355_s21 = scalar_lea.hbm %s459_s4, 16 }
 0x212   :  { %p356_p13 = scmp.ne.s32.totalorder %s459_s4, %s355_s21  ;;  %p359_p0 = scmp.lt.u32.totalorder %s355_s21, %s459_s4 }
 0x214   :  { %p361_p1 = pnand %p359_p0, %p356_p13 }
 0x216   :  { %364 = shalt.err (!%p361_p1)
}
 0x217   :  { %263 = dma.vmem_to_hbm [thread:$0]  %s261_s16, 16, %s459_s4, [#allocation4]  }
 0x218   :  { %367 = dma.done.wait [#allocation4], 16  }
 0x219   :  { %368 = vsyncadd [#allocation4], 4294967280 }
 0x21a   :  { %267 = vsyncpa [#allocation3], 1 }
 0x21b   :  { %268 = vsyncpa [#allocation4], 1 }

</bundles_post_ra>
